<compile_context>
chip_gen: v5e
topology: v5e:2x2
jax: 0.10.0
libtpu: 0.0.40
codegen_flags: <defaults>
</compile_context>

<pallas_src>
import functools

import jax
import jax.numpy as jnp
from jax import lax
from jax.experimental import pallas as pl
from jax.experimental.pallas import tpu as pltpu

FEATS = 512                    # nc[-1] for arch='medium'
HID = FEATS // 2               # GRU hidden size per direction (256)
NUM_CLASSES = 10
PATCH = 8                      # synthetic encoder patch size (stride-8 final feature map)
HEAD_PAD = 128                 # lane-dense padded head width (sliced back to num_classes)
VMEM_LIMIT = 48 * 1024 * 1024  # scoped-VMEM budget; safe on v5e/v6e (128 MiB) and v7x (64 MiB)


# ---------------------------------------------------------------------------
# Fused encoder patch-embedding + AdaptiveAvgPool2d(1)  (pool-before-project)
# ---------------------------------------------------------------------------
def _enc_pool_kernel(x_ref, w_ref, b_ref, o_ref, acc_ref, *, inv_p):
    j = pl.program_id(1)

    @pl.when(j == 0)
    def _():
        acc_ref[...] = jnp.zeros_like(acc_ref)

    # Per-slice partial patch sums: sublane/XLU reduction, MXU left idle for the
    # real projection.  f32 accumulation of bf16 inputs.
    acc_ref[...] += jnp.sum(x_ref[...].astype(jnp.float32), axis=1)

    @pl.when(j == pl.num_programs(1) - 1)
    def _():
        # Projection of the pooled (mean) patch: one tiny (tn, K) @ (K, C) bf16 matmul.
        mean = (acc_ref[...] * inv_p).astype(jnp.bfloat16)
        o_ref[...] = (jnp.dot(mean, w_ref[...],
                              preferred_element_type=jnp.float32)
                      + b_ref[...]).astype(o_ref.dtype)


def encode_and_pool(patches, w, b, *, tn=8, tp_max=1024):
    """(N, P, K) bf16 patches -> (N, C) per-slice mean feature (pool + projection fused)."""
    n, p, k = patches.shape
    c = w.shape[1]
    tp = p if p <= tp_max else tp_max
    n_pad = pl.cdiv(n, tn) * tn
    p_pad = pl.cdiv(p, tp) * tp
    if (n_pad, p_pad) != (n, p):
        # zero patch-padding adds 0 to the sum; slice-padding rows are dropped below
        patches = jnp.pad(patches, ((0, n_pad - n), (0, p_pad - p), (0, 0)))

    kernel = functools.partial(_enc_pool_kernel, inv_p=1.0 / p)
    out = pl.pallas_call(
        kernel,
        out_shape=jax.ShapeDtypeStruct((n_pad, c), jnp.float32),
        grid_spec=pltpu.PrefetchScalarGridSpec(
            num_scalar_prefetch=0,
            grid=(n_pad // tn, p_pad // tp),
            in_specs=[pl.BlockSpec((tn, tp, k), lambda i, j: (i, j, 0)),
                      pl.BlockSpec((k, c), lambda i, j: (0, 0)),
                      pl.BlockSpec((1, c), lambda i, j: (0, 0))],
            out_specs=pl.BlockSpec((tn, c), lambda i, j: (i, 0)),
            scratch_shapes=[pltpu.VMEM((tn, k), jnp.float32)]),
        compiler_params=pltpu.CompilerParams(
            dimension_semantics=("parallel", "arbitrary"),
            vmem_limit_bytes=VMEM_LIMIT),
    )(patches, w.astype(jnp.bfloat16), b.reshape(1, -1).astype(jnp.float32))
    return out[:n]


# ---------------------------------------------------------------------------
# Row-tiled matmul + bias (GRU input projections, classification head) — bf16 MXU
# ---------------------------------------------------------------------------
def _matmul_bias_kernel(x_ref, w_ref, b_ref, o_ref):
    o_ref[...] = (jnp.dot(x_ref[...], w_ref[...],
                          preferred_element_type=jnp.float32)
                  + b_ref[...]).astype(o_ref.dtype)


def matmul_bias(x, w, b, *, tm_max=1024):
    """(M, K) @ (K, N) + bias; bf16 operands, f32 accumulation, real grid over M."""
    m, k = x.shape
    n = w.shape[1]
    tm = min(tm_max, pl.cdiv(m, 16) * 16)     # bf16 sublane packing = 16
    m_pad = pl.cdiv(m, tm) * tm
    if m_pad != m:
        x = jnp.pad(x, ((0, m_pad - m), (0, 0)))
    out = pl.pallas_call(
        _matmul_bias_kernel,
        out_shape=jax.ShapeDtypeStruct((m_pad, n), jnp.float32),
        grid_spec=pltpu.PrefetchScalarGridSpec(
            num_scalar_prefetch=0,
            grid=(m_pad // tm,),
            in_specs=[pl.BlockSpec((tm, k), lambda i: (i, 0)),
                      pl.BlockSpec((k, n), lambda i: (0, 0)),
                      pl.BlockSpec((1, n), lambda i: (0, 0))],
            out_specs=pl.BlockSpec((tm, n), lambda i: (i, 0))),
        compiler_params=pltpu.CompilerParams(
            dimension_semantics=("parallel",),
            vmem_limit_bytes=VMEM_LIMIT),
    )(x.astype(jnp.bfloat16), w.astype(jnp.bfloat16),
      b.reshape(1, -1).astype(jnp.float32))
    return out[:m]


# ---------------------------------------------------------------------------
# Bidirectional GRU — per-direction recurrence kernel (grid over direction)
# ---------------------------------------------------------------------------
def _gru_dir_kernel(gx_ref, whh_ref, bhh_ref, o_ref, h_ref):
    """One GRU direction (grid axis 0: 0 = forward, 1 = backward).

    gx_ref:  (T, B, 3H) f32 precomputed input projections (incl. bih), gates [r|z|n].
    whh_ref: (1, H, 3H) bf16 recurrent weights, gates [r|z|n].
    bhh_ref: (1, 1, 3H) f32 recurrent bias.
    o_ref:   (T, B, H)  f32 per-step hidden states (original time order).
    h_ref:   (B, H)     f32 state scratch.
    """
    T = gx_ref.shape[0]
    H = h_ref.shape[1]
    is_bwd = pl.program_id(0) == 1
    h_ref[...] = jnp.zeros_like(h_ref)
    bhh = bhh_ref[0]                                              # (1, 3H)

    def step(s, carry):
        t = jnp.where(is_bwd, T - 1 - s, s)                       # time reversal in-kernel
        h = h_ref[...]
        gh = jnp.dot(h.astype(jnp.bfloat16), whh_ref[0],
                     preferred_element_type=jnp.float32) + bhh    # (B, 3H) f32
        gx = gx_ref[t]                                            # (B, 3H) f32
        r = jax.nn.sigmoid(gx[:, 0:H] + gh[:, 0:H])
        z = jax.nn.sigmoid(gx[:, H:2 * H] + gh[:, H:2 * H])
        n = jnp.tanh(gx[:, 2 * H:3 * H] + r * gh[:, 2 * H:3 * H])
        h_new = (1.0 - z) * n + z * h
        h_ref[...] = h_new
        o_ref[t] = h_new
        return carry

    lax.fori_loop(0, T, step, 0, unroll=True)


def bigru(feat_btf, p):
    """nn.GRU(512, 256, num_layers=1, bidirectional=True, batch_first=True), h0 = 0."""
    B, T, F = feat_btf.shape
    H = HID

    # --- input projections for BOTH directions hoisted into one batched MXU matmul ---
    x_tbf = jnp.transpose(feat_btf, (1, 0, 2)).reshape(T * B, F)
    wih = jnp.concatenate([p['wih_f'], p['wih_b']], axis=1)            # (F, 6H) [fwd|bwd]
    bih = jnp.concatenate([p['bih_f'], p['bih_b']], axis=1)            # (1, 6H)
    gx = matmul_bias(x_tbf, wih, bih).reshape(T, B, 6 * H)             # f32, T-major

    whh = jnp.stack([p['whh_f'], p['whh_b']]).astype(jnp.bfloat16)     # (2, H, 3H)
    bhh = jnp.stack([p['bhh_f'], p['bhh_b']])                          # (2, 1, 3H)

    out = pl.pallas_call(
        _gru_dir_kernel,
        out_shape=jax.ShapeDtypeStruct((T, B, 2 * H), jnp.float32),
        grid_spec=pltpu.PrefetchScalarGridSpec(
            num_scalar_prefetch=0,
            grid=(2,),                                                 # direction: fwd, bwd
            in_specs=[pl.BlockSpec((T, B, 3 * H), lambda d: (0, 0, d)),
                      pl.BlockSpec((1, H, 3 * H), lambda d: (d, 0, 0)),
                      pl.BlockSpec((1, 1, 3 * H), lambda d: (d, 0, 0))],
            out_specs=pl.BlockSpec((T, B, H), lambda d: (0, 0, d)),
            scratch_shapes=[pltpu.VMEM((B, H), jnp.float32)]),
        compiler_params=pltpu.CompilerParams(
            dimension_semantics=("parallel",),                         # 2 TCs on v7x
            vmem_limit_bytes=VMEM_LIMIT),
    )(gx, whh, bhh)

    return jnp.transpose(out, (1, 0, 2))                               # (B, T, 2H), [fwd|bwd]


# ---------------------------------------------------------------------------
# Parameter init (deterministic, in-script) and forward pass
# ---------------------------------------------------------------------------
def init_params(key, in_chans=3, num_classes=NUM_CLASSES):
    ks = jax.random.split(key, 12)
    patch_feats = in_chans * PATCH * PATCH

    def u(k, shape, fan):
        bound = 1.0 / jnp.sqrt(jnp.float32(fan))
        return jax.random.uniform(k, shape, jnp.float32, -bound, bound)

    return {
        # synthetic encoder patch-embed (stand-in for coat_lite_medium last stage)
        'enc_w': u(ks[0], (patch_feats, FEATS), patch_feats),
        'enc_b': u(ks[1], (FEATS,), patch_feats),
        # bidirectional GRU (torch stores (3H, F)/(3H, H); we store transposed, gates r|z|n)
        'wih_f': u(ks[2], (FEATS, 3 * HID), HID),
        'whh_f': u(ks[3], (HID, 3 * HID), HID),
        'bih_f': u(ks[4], (1, 3 * HID), HID),
        'bhh_f': u(ks[5], (1, 3 * HID), HID),
        'wih_b': u(ks[6], (FEATS, 3 * HID), HID),
        'whh_b': u(ks[7], (HID, 3 * HID), HID),
        'bih_b': u(ks[8], (1, 3 * HID), HID),
        'bhh_b': u(ks[9], (1, 3 * HID), HID),
        # head: nn.Linear(512, num_classes)
        'head_w': u(ks[10], (FEATS, num_classes), FEATS),
        'head_b': u(ks[11], (num_classes,), FEATS),
    }


def forward(params, x):
    """x: (bs, n_slice_per_c, in_chans, image_size, image_size) — NCHW per slice."""
    bs, n_slice, in_chans, H, W = x.shape
    N = bs * n_slice

    # --- encoder: cast to bf16 BEFORE the patchify relayout (halves HBM traffic), then
    #     fused pool+projection (AdaptiveAvgPool2d(1) commuted with the linear embed) ---
    xf = x.astype(jnp.bfloat16).reshape(N, in_chans, H, W)
    ph, pw = H // PATCH, W // PATCH
    patches = xf.reshape(N, in_chans, ph, PATCH, pw, PATCH)
    patches = patches.transpose(0, 2, 4, 1, 3, 5).reshape(
        N, ph * pw, in_chans * PATCH * PATCH)
    avg_feat = encode_and_pool(patches, params['enc_w'], params['enc_b'])   # (N, 512)
    feat = avg_feat.reshape(bs, n_slice, FEATS)

    # --- self.lstm2: bidirectional GRU ---
    feat = bigru(feat, params)                                              # (bs, n_slice, 512)

    # --- self.head: Dropout(0.1) [identity @ inference] + Linear(512, num_classes) ---
    num_classes = params['head_w'].shape[1]
    head_w = jnp.pad(params['head_w'], ((0, 0), (0, HEAD_PAD - num_classes)))
    head_b = jnp.pad(params['head_b'], (0, HEAD_PAD - num_classes))
    logits = matmul_bias(feat.reshape(N, 2 * HID), head_w, head_b)[:, :num_classes]
    return logits.reshape(bs, n_slice, num_classes)


if __name__ == "__main__":
    key = jax.random.PRNGKey(0)
    pkey, xkey = jax.random.split(key)

    bs, n_slice, in_chans, img = 2, 4, 3, 32
    params = init_params(pkey, in_chans=in_chans, num_classes=NUM_CLASSES)
    x = jax.random.normal(xkey, (bs, n_slice, in_chans, img, img), jnp.float32)

    out = forward(params, x)
    out = jax.block_until_ready(out)
    assert out.shape == (bs, n_slice, NUM_CLASSES), out.shape
    assert bool(jnp.all(jnp.isfinite(out)))
    print("KERNEL_OK")
</pallas_src>

<mosaic_0001>
module attributes {stable_mosaic.version = 11 : i64} {
  func.func @_enc_pool_kernel(%arg0: i32, %arg1: i32, %arg2: memref<8x16x192xbf16, #tpu.memory_space<vmem>>, %arg3: memref<192x512xbf16, #tpu.memory_space<vmem>>, %arg4: memref<1x512xf32, #tpu.memory_space<vmem>>, %arg5: memref<8x512xf32, #tpu.memory_space<vmem>>, %arg6: memref<8x192xf32, #tpu.memory_space<vmem>>) attributes {dimension_semantics = [#tpu.dimension_semantics<parallel>, #tpu.dimension_semantics<arbitrary>], iteration_bounds = array<i64: 1, 1>, scalar_prefetch = 0 : i64, scratch_operands = 1 : i64, tpu.core_type = #tpu.core_type<tc>, window_params = [{transform_indices = @transform_0, window_bounds = array<i64: 8, 16, 192>}, {pipeline_mode = #tpu.pipeline_mode<synchronous>, transform_indices = @transform_1, window_bounds = array<i64: 192, 512>}, {pipeline_mode = #tpu.pipeline_mode<synchronous>, transform_indices = @transform_2, window_bounds = array<i64: 1, 512>}, {transform_indices = @transform_3, window_bounds = array<i64: 8, 512>}]} {
    %c0_i32 = arith.constant 0 : i32
    %0 = arith.cmpi eq, %arg1, %c0_i32 : i32
    %1 = arith.extui %0 : i1 to i32
    %c0_i32_0 = arith.constant 0 : i32
    %2 = arith.cmpi ne, %1, %c0_i32_0 : i32
    scf.if %2 {
      %cst_9 = arith.constant 0.000000e+00 : f32
      %12 = vector.broadcast %cst_9 : f32 to vector<8x192xf32>
      %c0_10 = arith.constant 0 : index
      %c0_11 = arith.constant 0 : index
      %13 = vector.load %arg6[%c0_10, %c0_11] : memref<8x192xf32, #tpu.memory_space<vmem>>, vector<8x192xf32>
      tpu.vector_store %arg6[%c0_10, %c0_11], %12 {strides = array<i32>} : memref<8x192xf32, #tpu.memory_space<vmem>>, vector<8x192xf32>,
    } else {
    }
    %c0 = arith.constant 0 : index
    %c0_1 = arith.constant 0 : index
    %3 = vector.load %arg6[%c0, %c0_1] : memref<8x192xf32, #tpu.memory_space<vmem>>, vector<8x192xf32>
    %c0_2 = arith.constant 0 : index
    %c0_3 = arith.constant 0 : index
    %c0_4 = arith.constant 0 : index
    %4 = vector.load %arg2[%c0_2, %c0_3, %c0_4] : memref<8x16x192xbf16, #tpu.memory_space<vmem>>, vector<8x16x192xbf16>
    %5 = arith.extf %4 : vector<8x16x192xbf16> to vector<8x16x192xf32>
    %cst = arith.constant dense<0.000000e+00> : vector<8x192xf32>
    %6 = vector.multi_reduction <add>, %5, %cst [1] : vector<8x16x192xf32> to vector<8x192xf32>
    %7 = arith.addf %3, %6 : vector<8x192xf32>
    %c0_5 = arith.constant 0 : index
    %c0_6 = arith.constant 0 : index
    %8 = vector.load %arg6[%c0_5, %c0_6] : memref<8x192xf32, #tpu.memory_space<vmem>>, vector<8x192xf32>
    tpu.vector_store %arg6[%c0_5, %c0_6], %7 {strides = array<i32>} : memref<8x192xf32, #tpu.memory_space<vmem>>, vector<8x192xf32>,
    %c0_i32_7 = arith.constant 0 : i32
    %9 = arith.cmpi eq, %arg1, %c0_i32_7 : i32
    %10 = arith.extui %9 : i1 to i32
    %c0_i32_8 = arith.constant 0 : i32
    %11 = arith.cmpi ne, %10, %c0_i32_8 : i32
    scf.if %11 {
      %c0_9 = arith.constant 0 : index
      %c0_10 = arith.constant 0 : index
      %12 = vector.load %arg6[%c0_9, %c0_10] : memref<8x192xf32, #tpu.memory_space<vmem>>, vector<8x192xf32>
      %cst_11 = arith.constant 6.250000e-02 : f32
      %13 = vector.broadcast %cst_11 : f32 to vector<8x192xf32>
      %14 = arith.mulf %12, %13 : vector<8x192xf32>
      %15 = arith.truncf %14 : vector<8x192xf32> to vector<8x192xbf16>
      %c0_12 = arith.constant 0 : index
      %c0_13 = arith.constant 0 : index
      %16 = vector.load %arg3[%c0_12, %c0_13] : memref<192x512xbf16, #tpu.memory_space<vmem>>, vector<192x512xbf16>
      %cst_14 = arith.constant dense<0.000000e+00> : vector<8x512xf32>
      %17 = tpu.matmul %15, %16, %cst_14 {dimension_numbers = #tpu.dot_dimension_numbers<[1], [0], [0], [1], [0, 0, 1, 1], [], []>} : vector<8x192xbf16>, vector<192x512xbf16>, vector<8x512xf32> -> vector<8x512xf32>
      %c0_15 = arith.constant 0 : index
      %c0_16 = arith.constant 0 : index
      %18 = vector.load %arg4[%c0_15, %c0_16] : memref<1x512xf32, #tpu.memory_space<vmem>>, vector<1x512xf32>
      %19 = vector.broadcast %18 : vector<1x512xf32> to vector<8x512xf32>
      %20 = arith.addf %17, %19 : vector<8x512xf32>
      %c0_17 = arith.constant 0 : index
      %c0_18 = arith.constant 0 : index
      %21 = vector.load %arg5[%c0_17, %c0_18] : memref<8x512xf32, #tpu.memory_space<vmem>>, vector<8x512xf32>
      tpu.vector_store %arg5[%c0_17, %c0_18], %20 {strides = array<i32>} : memref<8x512xf32, #tpu.memory_space<vmem>>, vector<8x512xf32>,
    } else {
    }
    return
  }
  func.func @transform_0(%arg0: i32, %arg1: i32) -> (i32, i32, i32) {
    %c0_i32 = arith.constant 0 : i32
    %c0_i32_0 = arith.constant 0 : i32
    return %arg0, %arg1, %c0_i32 : i32, i32, i32
  }
  func.func @transform_1(%arg0: i32, %arg1: i32) -> (i32, i32) {
    %c0_i32 = arith.constant 0 : i32
    %c0_i32_0 = arith.constant 0 : i32
    %c0_i32_1 = arith.constant 0 : i32
    return %c0_i32, %c0_i32_0 : i32, i32
  }
  func.func @transform_2(%arg0: i32, %arg1: i32) -> (i32, i32) {
    %c0_i32 = arith.constant 0 : i32
    %c0_i32_0 = arith.constant 0 : i32
    %c0_i32_1 = arith.constant 0 : i32
    return %c0_i32, %c0_i32_0 : i32, i32
  }
  func.func @transform_3(%arg0: i32, %arg1: i32) -> (i32, i32) {
    %c0_i32 = arith.constant 0 : i32
    %c0_i32_0 = arith.constant 0 : i32
    return %arg0, %c0_i32 : i32, i32
  }
}

</mosaic_0001>

<bundles_post_ra>
// kernel: tpu_custom_call.1
= control target key start
LH: loop header
LB: loop body
LE: loop exit
PB: predicated region body
PF: predicated region fallthrough
CT: control target
= control target key end

     0   :  { %8 = vsyncpa [#allocation4], 0  ;;  %s1344_s0 = inlined_call_operand.hbm [shape: bf16[8,16,192], index: 0, kind: input, shape index: {}]   ;;  %s1345_s1 = inlined_call_operand.hbm [shape: bf16[192,512], index: 1, kind: input, shape index: {}]   ;;  %s1346_s2 = inlined_call_operand.hbm [shape: f32[1,512], index: 2, kind: input, shape index: {}]   ;;  %s1347_s3 = inlined_call_operand.hbm [shape: f32[8,512], index: 3, kind: output, shape index: {}]  }
   0x1   :  { %9 = vsyncpa [#allocation7], 0  ;;  %s28_s14 = sshll.u32 %s1345_s1, 4  ;;  %s29_s14 = int_to_ptr.hbm [resolvable:$true] %s28_s14 }
   0x2   :  { %10 = vsyncpa [#allocation5], 0  ;;  %s1081_s15 = smov [#allocation6]   ;;  %s15_s19 = sshll.u32 %s1344_s0, 4  ;;  %s16_s19 = int_to_ptr.hbm [resolvable:$true] %s15_s19 }
   0x3   :  { %s30_s16 = sshll.u32 %s1081_s15, 4  ;;  %s1082_s20 = smov 256   ;;  %s31_s16 = int_to_ptr.vmem [resolvable:$true] %s30_s16 }
   0x4   :  { %s1083_s21 = smov 16   ;;  %s1084_s22 = smov [#allocation3]  }
   0x5   :  { %36 = dma.hbm_to_vmem [thread:$0]  %s29_s14, 6144, %s31_s16, [#allocation7], %s1082_s20, %s1082_s20, %s1083_s21  }
   0x6   :  { %s17_s23 = sshll.u32 %s1084_s22, 4  ;;  %s1085_s24 = smov 128   ;;  %s18_s23 = int_to_ptr.vmem [resolvable:$true] %s17_s23 }
   0x7   :  { %s1086_s25 = smov 8   ;;  %s42_s27 = sshll.u32 %s1346_s2, 4  ;;  %s43_s27 = int_to_ptr.hbm [resolvable:$true] %s42_s27 }
   0x8   :  { %23 = dma.hbm_to_vmem [thread:$0]  %s16_s19, 2048, %s18_s23, [#allocation4], %s1085_s24, %s1085_s24, %s1086_s25  }
   0x9   :  { %s1087_s28 = smov [#allocation8]  }
   0xa   :  { %s44_s29 = sshll.u32 %s1087_s28, 4  ;;  %s45_s29 = int_to_ptr.vmem [resolvable:$true] %s44_s29 }
   0xb   :  { %47 = dma.hbm_to_vmem [thread:$0]  %s43_s27, 64, %s45_s29, [#allocation7]  }
   0xc   :  { %1075 = dma.done.wait [#allocation4], 2048  }
   0xd   :  { %1076 = vsyncadd [#allocation4], 4294965248 }
   0xe   :  { %1077 = dma.done.wait [#allocation7], 6208  }
   0xf   :  { %1078 = vsyncadd [#allocation7], 4294961088  ;;  %vm66_vm0 = vcmask 523264   ;;  %v1088_v0 = vmov 0.0   ;;  %v840_v1 = vld [vmem:[#allocation6 + $0xe0] sm:$0xf] }
  0x10   :  { %67 = vst.msk [vmem:[#allocation2 + $0x8] sm:$0xff] %vm66_vm0, %v1088_v0  ;;  %v952_v2 = vld [vmem:[#allocation6 + $0xec] sm:$0xf0]  ;;  %v824_v3 = vld [vmem:[#allocation6 + $0xc0] sm:$0xf]  ;;  %vm263_vm1 = vcmask 1041409  }
  0x11   :  { %v841_v4 = vor.u32 %v952_v2, %v840_v1  ;;  %v948_v5 = vld [vmem:[#allocation6 + $0xcc] sm:$0xf0]  ;;  %v950_v6 = vld [vmem:[#allocation6 + $0xe4] sm:$0xf]  ;;  %v842_v7 = vld [vmem:[#allocation6 + $0xf0] sm:$0xf0] }
  0x12   :  { %v845_v8 = vor.u32 %v950_v6, %v842_v7  ;;  %v904_v9 = vld [vmem:[#allocation6 + $0x160] sm:$0xf]  ;;  %v825_v10 = vor.u32 %v948_v5, %v824_v3  ;;  %v968_v11 = vld [vmem:[#allocation6 + $0x16c] sm:$0xf0]  ;;  %v946_v12 = vld [vmem:[#allocation6 + $0xc4] sm:$0xf] }
  0x13   :  { %600 = vmatpush.bf16.msra.mxu0 %v841_v4  ;;  %v826_v13 = vld [vmem:[#allocation6 + $0xd0] sm:$0xf0]  ;;  %v808_v14 = vld [vmem:[#allocation6 + $0xa0] sm:$0xf]  ;;  %v944_v15 = vld [vmem:[#allocation6 + $0xac] sm:$0xf0]  ;;  %v905_v16 = vor.u32 %v968_v11, %v904_v9 }
  0x14   :  { %626 = vmatpush.bf16.msra.mxu2 %v845_v8  ;;  %v829_v17 = vor.u32 %v946_v12, %v826_v13  ;;  %v888_v18 = vld [vmem:[#allocation6 + $0x140] sm:$0xf]  ;;  %v964_v19 = vld [vmem:[#allocation6 + $0x14c] sm:$0xf0]  ;;  %v942_v20 = vld [vmem:[#allocation6 + $0xa4] sm:$0xf]  ;;  %v809_v23 = vor.u32 %v944_v15, %v808_v14 }
  0x15   :  { %v810_v21 = vld [vmem:[#allocation6 + $0xb0] sm:$0xf0]  ;;  %617 = vmatpush.bf16.msra.mxu1 %v905_v16  ;;  %v889_v22 = vor.u32 %v964_v19, %v888_v18  ;;  %v872_v24 = vld [vmem:[#allocation6 + $0x120] sm:$0xf]  ;;  %v960_v25 = vld [vmem:[#allocation6 + $0x12c] sm:$0xf0] }
  0x16   :  { %v792_v26 = vld [vmem:[#allocation6 + $0x80] sm:$0xf]  ;;  %v940_v27 = vld [vmem:[#allocation6 + $0x8c] sm:$0xf0]  ;;  %v813_v28 = vor.u32 %v942_v20, %v810_v21  ;;  %v938_v29 = vld [vmem:[#allocation6 + $0x84] sm:$0xf]  ;;  %v873_v33 = vor.u32 %v960_v25, %v872_v24 }
  0x17   :  { %601 = vmatpush.bf16.msra.mxu0 %v825_v10  ;;  %v794_v30 = vld [vmem:[#allocation6 + $0x90] sm:$0xf0]  ;;  %v776_v31 = vld [vmem:[#allocation6 + $0x60] sm:$0xf]  ;;  %v936_v32 = vld [vmem:[#allocation6 + $0x6c] sm:$0xf0]  ;;  %v793_v37 = vor.u32 %v940_v27, %v792_v26 }
  0x18   :  { %627 = vmatpush.bf16.msra.mxu2 %v829_v17  ;;  %v856_v34 = vld [vmem:[#allocation6 + $0x100] sm:$0xf]  ;;  %v966_v35 = vld [vmem:[#allocation6 + $0x164] sm:$0xf]  ;;  %v906_v36 = vld [vmem:[#allocation6 + $0x170] sm:$0xf0]  ;;  %v797_v42 = vor.u32 %v938_v29, %v794_v30  ;;  %v777_v60 = vor.u32 %v936_v32, %v776_v31 }
  0x19   :  { %618 = vmatpush.bf16.msra.mxu1 %v889_v22  ;;  %v956_v38 = vld [vmem:[#allocation6 + $0x10c] sm:$0xf0]  ;;  %v934_v39 = vld [vmem:[#allocation6 + $0x64] sm:$0xf]  ;;  %v778_v40 = vld [vmem:[#allocation6 + $0x70] sm:$0xf0]  ;;  %v909_v41 = vor.u32 %v966_v35, %v906_v36 }
  0x1a   :  { %v1120_v43 = vld [vmem:[#allocation6 + $0x40] sm:$0xf]  ;;  %v1122_v44 = vld [vmem:[#allocation6 + $0x4c] sm:$0xf0]  ;;  %v848_v45 = vld [vmem:[#allocation6 + $0xe8] sm:$0xf]  ;;  %v857_v55 = vor.u32 %v956_v38, %v856_v34  ;;  %v781_v1 = vor.u32 %v934_v39, %v778_v40 }
  0x1b   :  { %602 = vmatpush.bf16.msra.mxu0 %v809_v23  ;;  %v953_v46 = vld [vmem:[#allocation6 + $0xf4] sm:$0xf0]  ;;  %v962_v47 = vld [vmem:[#allocation6 + $0x144] sm:$0xf]  ;;  %643 = vmatpush.bf16.msra.mxu3 %v909_v41  ;;  %v1124_v48 = vld [vmem:[#allocation6 + $0x20] sm:$0xf]  ;;  %v761_v5 = vor.u32 %v1122_v44, %v1120_v43 }
  0x1c   :  { %628 = vmatpush.bf16.msra.mxu2 %v813_v28  ;;  %v1126_v49 = vld [vmem:[#allocation6 + $0x2c] sm:$0xf0]  ;;  %v1128_v50 = vld [vmem:[#allocation6 + $0x44] sm:$0xf]  ;;  %v1130_v51 = vld [vmem:[#allocation6 + $0x50] sm:$0xf0]  ;;  %v849_v61 = vor.u32 %v953_v46, %v848_v45 }
  0x1d   :  { %v890_v52 = vld [vmem:[#allocation6 + $0x150] sm:$0xf0]  ;;  %v1132_v53 = vld [vmem:[#allocation6 + $0xc8] sm:$0xf]  ;;  %v1134_v54 = vld [vmem:[#allocation6 + $0xd4] sm:$0xf0]  ;;  %619 = vmatpush.bf16.msra.mxu1 %v873_v33  ;;  %v745_v10 = vor.u32 %v1126_v49, %v1124_v48  ;;  %v765_v11 = vor.u32 %v1128_v50, %v1130_v51 }
  0x1e   :  { %v893_v56 = vor.u32 %v962_v47, %v890_v52  ;;  %v1136_v57 = vld [vmem:[#allocation6] sm:$0xf]  ;;  %v1138_v58 = vld [vmem:[#allocation6 + $0xc] sm:$0xf0]  ;;  %v1140_v59 = vld [vmem:[#allocation6 + $0x24] sm:$0xf]  ;;  %v833_v12 = vor.u32 %v1134_v54, %v1132_v53 }
  0x1f   :  { %603 = vmatpush.bf16.msra.mxu0 %v793_v37  ;;  %v1142_v62 = vld [vmem:[#allocation6 + $0x30] sm:$0xf0]  ;;  %v958_v63 = vld [vmem:[#allocation6 + $0x124] sm:$0xf]  ;;  %v1144_v2 = vld [vmem:[#allocation6 + $0xa8] sm:$0xf]  ;;  %v729_v13 = vor.u32 %v1138_v58, %v1136_v57 }
  0x20   :  { %v874_v0 = vld [vmem:[#allocation6 + $0x130] sm:$0xf0]  ;;  %629 = vmatpush.bf16.msra.mxu2 %v797_v42  ;;  %v1146_v3 = vld [vmem:[#allocation6 + $0xb4] sm:$0xf0]  ;;  %v1148_v4 = vld [vmem:[#allocation6 + $0xec] sm:$0xf]  ;;  %644 = vmatpush.bf16.msra.mxu3 %v893_v56  ;;  %v749_v17 = vor.u32 %v1140_v59, %v1142_v62 }
  0x21   :  { %v877_v6 = vor.u32 %v958_v63, %v874_v0  ;;  %v1152_v7 = vld [vmem:[#allocation6 + $0xf8] sm:$0xf0]  ;;  %v1154_v8 = vld [vmem:[#allocation6 + $0x4] sm:$0xf]  ;;  %v1156_v9 = vld [vmem:[#allocation6 + $0x10] sm:$0xf0]  ;;  %620 = vmatpush.bf16.msra.mxu1 %v857_v55  ;;  %v817_v18 = vor.u32 %v1146_v3, %v1144_v2 }
  0x22   :  { %v954_v14 = vld [vmem:[#allocation6 + $0x104] sm:$0xf]  ;;  %v858_v15 = vld [vmem:[#allocation6 + $0x110] sm:$0xf0]  ;;  %v1166_v16 = vld [vmem:[#allocation6 + $0x88] sm:$0xf]  ;;  %v853_v19 = vor.u32 %v1148_v4, %v1152_v7  ;;  %v733_v23 = vor.u32 %v1154_v8, %v1156_v9 }
  0x23   :  { %604 = vmatpush.bf16.msra.mxu0 %v777_v60  ;;  %v1174_v20 = vld [vmem:[#allocation6 + $0x94] sm:$0xf0]  ;;  %v1176_v21 = vld [vmem:[#allocation6 + $0xcc] sm:$0xf]  ;;  %v1178_v22 = vld [vmem:[#allocation6 + $0xd8] sm:$0xf0]  ;;  %v861_v24 = vor.u32 %v954_v14, %v858_v15 }
  0x24   :  { %630 = vmatpush.bf16.msra.mxu2 %v781_v1  ;;  %v801_v25 = vor.u32 %v1174_v20, %v1166_v16  ;;  %v837_v26 = vor.u32 %v1176_v21, %v1178_v22  ;;  %v1186_v27 = vld [vmem:[#allocation3] sm:$0xff]  ;;  %v1188_v28 = vld [vmem:[#allocation3 + $0x8] sm:$0xff]  ;;  %v1190_v29 = vld [vmem:[#allocation3 + $0x10] sm:$0xff]  ;;  %645 = vmatpush.bf16.msra.mxu3 %v877_v6  ;;  %vm265_vm2 = vcmask 1042434   ;;  %vm267_vm3 = vcmask 1043459   ;;  %s1089_s0 = smov [#allocation9]  }
  0x25   :  { %652 = vmatpush.bf16.msrb.mxu1 %v849_v61  ;;  %v1192_v30 = vld [vmem:[#allocation3 + $0x18] sm:$0xff]  ;;  %v1194_v31 = vld [vmem:[#allocation3 + $0x20] sm:$0xff]  ;;  %v1196_v32 = vld [vmem:[#allocation3 + $0x28] sm:$0xff]  ;;  %v86_v33 = vunpack.c.l.bf16 %v1186_v27  ;;  %v87_v34 = vunpack.c.h.bf16 %v1186_v27  ;;  %v88_v35 = vunpack.c.l.bf16 %v1188_v28  ;;  %v89_v36 = vunpack.c.h.bf16 %v1188_v28  ;;  %s713_s2 = sshll.u32 %s1089_s0, 4  ;;  %s715_s5 = sshll.u32 %s1347_s3, 4  ;;  %s714_s2 = int_to_ptr.vmem [resolvable:$true] %s713_s2  ;;  %s716_s5 = int_to_ptr.hbm [resolvable:$true] %s715_s5 }
  0x26   :  { %v1202_v37 = vld [vmem:[#allocation3 + $0x30] sm:$0xff]  ;;  %v1204_v38 = vld [vmem:[#allocation3 + $0x38] sm:$0xff]  ;;  %v1206_v39 = vld [vmem:[#allocation3 + $0x40] sm:$0xff]  ;;  %v90_v40 = vunpack.c.l.bf16 %v1190_v29  ;;  %v91_v41 = vunpack.c.h.bf16 %v1190_v29  ;;  %v92_v42 = vunpack.c.l.bf16 %v1192_v30  ;;  %v93_v43 = vunpack.c.h.bf16 %v1192_v30 }
  0x27   :  { %605 = vmatpush.bf16.msra.mxu0 %v761_v5  ;;  %v1212_v44 = vld [vmem:[#allocation3 + $0x48] sm:$0xff]  ;;  %v1214_v45 = vld [vmem:[#allocation3 + $0x50] sm:$0xff]  ;;  %v1216_v46 = vld [vmem:[#allocation3 + $0x58] sm:$0xff]  ;;  %v94_v47 = vunpack.c.l.bf16 %v1194_v31  ;;  %v95_v50 = vunpack.c.h.bf16 %v1194_v31  ;;  %v96_v51 = vunpack.c.l.bf16 %v1196_v32  ;;  %v98_v55 = vunpack.c.l.bf16 %v1202_v37 }
  0x28   :  { %631 = vmatpush.bf16.msra.mxu2 %v765_v11  ;;  %v1222_v53 = vld [vmem:[#allocation3 + $0x60] sm:$0xff]  ;;  %v1224_v54 = vld [vmem:[#allocation3 + $0x68] sm:$0xff]  ;;  %v100_v59 = vunpack.c.l.bf16 %v1204_v38  ;;  %646 = vmatpush.bf16.msra.mxu3 %v861_v24  ;;  %v1230_v61 = vld [vmem:[#allocation3 + $0x70] sm:$0xff]  ;;  %v102_v63 = vunpack.c.l.bf16 %v1206_v39  ;;  %v104_v1 = vunpack.c.l.bf16 %v1212_v44  ;;  %v106_v3 = vunpack.c.l.bf16 %v1214_v45 }
  0x29   :  { %653 = vmatpush.bf16.msrb.mxu1 %v833_v12  ;;  %v1232_v62 = vld [vmem:[#allocation3 + $0x78] sm:$0xff]  ;;  %v108_v6 = vunpack.c.l.bf16 %v1216_v46  ;;  %v110_v12 = vunpack.c.l.bf16 %v1222_v53  ;;  %v112_v15 = vunpack.c.l.bf16 %v1224_v54  ;;  %v114_v5 = vunpack.c.l.bf16 %v1230_v61 }
  0x2a   :  { %v116_v11 = vunpack.c.l.bf16 %v1232_v62  ;;  %v118_v48 = vadd.f32 %v88_v35, %v86_v33  ;;  %v135_v49 = vadd.f32 %v92_v42, %v90_v40  ;;  %v183_v60 = vadd.f32 %v104_v1, %v102_v63 }
  0x2b   :  { %606 = vmatpush.bf16.msra.mxu0 %v745_v10  ;;  %v151_v10 = vadd.f32 %v96_v51, %v94_v47  ;;  %v199_v56 = vadd.f32 %v108_v6, %v106_v3  ;;  %v215_v14 = vadd.f32 %v112_v15, %v110_v12  ;;  %vm269_vm4 = vcmask 1044484  }
  0x2c   :  { %632 = vmatpush.bf16.msra.mxu2 %v749_v17  ;;  %v231_v52 = vadd.f32 %v116_v11, %v114_v5  ;;  %v119_v17 = vrot.slane %v118_v48, 4  ;;  %v136_v2 = vrot.slane %v135_v49, 4  ;;  %v184_v33 = vrot.slane %v183_v60, 4 }
  0x2d   :  { %654 = vmatpush.bf16.msrb.mxu1 %v817_v18  ;;  %v167_v18 = vadd.f32 %v100_v59, %v98_v55  ;;  %v152_v24 = vrot.slane %v151_v10, 4  ;;  %v200_v35 = vrot.slane %v199_v56, 4  ;;  %v216_v57 = vrot.slane %v215_v14, 4 }
  0x2e   :  { %v232_v58 = vrot.slane %v231_v52, 4  ;;  %v137_v40 = vadd.f32 %v136_v2, %v135_v49  ;;  %vm271_vm5 = vcmask 1045509   ;;  %vm273_vm6 = vcmask 1046534  }
  0x2f   :  { %607 = vmatpush.bf16.msra.mxu0 %v729_v13  ;;  %v168_v0 = vrot.slane %v167_v18, 4  ;;  %v120_v13 = vadd.f32 %v119_v17, %v118_v48  ;;  %v153_v16 = vadd.f32 %v152_v24, %v151_v10  ;;  %v201_v42 = vadd.f32 %v200_v35, %v199_v56 }
  0x30   :  { %633 = vmatpush.bf16.msra.mxu2 %v733_v23  ;;  %v217_v47 = vadd.f32 %v216_v57, %v215_v14  ;;  %v233_v51 = vadd.f32 %v232_v58, %v231_v52  ;;  %v138_v4 = vrot.slane %v137_v40, 2  ;;  %vm275_vm7 = vcmask 1047559  }
  0x31   :  { %655 = vmatpush.bf16.msrb.mxu1 %v801_v25  ;;  %v169_v20 = vadd.f32 %v168_v0, %v167_v18  ;;  %v185_v25 = vadd.f32 %v184_v33, %v183_v60  ;;  %v121_v55 = vrot.slane %v120_v13, 2  ;;  %v154_v7 = vrot.slane %v153_v16, 2 }
  0x32   :  { %v202_v9 = vrot.slane %v201_v42, 2  ;;  %v218_v23 = vrot.slane %v217_v47, 2  ;;  %v234_v59 = vrot.slane %v233_v51, 2  ;;  %v139_v0 = vadd.f32 %v138_v4, %v137_v40 }
  0x33   :  { %678 = vmatpush.bf16.msrb.mxu0 %v853_v19  ;;  %v170_v19 = vrot.slane %v169_v20, 2  ;;  %v186_v8 = vrot.slane %v185_v25, 2  ;;  %v122_v63 = vadd.f32 %v121_v55, %v120_v13  ;;  %v155_v60 = vadd.f32 %v154_v7, %v153_v16 }
  0x34   :  { %v203_v52 = vadd.f32 %v202_v9, %v201_v42  ;;  %v219_v2 = vadd.f32 %v218_v23, %v217_v47  ;;  %v235_v3 = vadd.f32 %v234_v59, %v233_v51  ;;  %v140_v6 = vrot.slane %v139_v0, 1 }
  0x35   :  { %v171_v56 = vadd.f32 %v170_v19, %v169_v20  ;;  %v187_v1 = vadd.f32 %v186_v8, %v185_v25  ;;  %v123_v5 = vrot.slane %v122_v63, 1  ;;  %v156_v11 = vrot.slane %v155_v60, 1 }
  0x36   :  { %v204_v15 = vrot.slane %v203_v52, 1  ;;  %v220_v21 = vrot.slane %v219_v2, 1  ;;  %v236_v22 = vrot.slane %v235_v3, 1  ;;  %v141_v24 = vadd.f32 %v140_v6, %v139_v0 }
  0x37   :  { %679 = vmatpush.bf16.msrb.mxu0 %v837_v26  ;;  %v172_v12 = vrot.slane %v171_v56, 1  ;;  %v188_v14 = vrot.slane %v187_v1, 1  ;;  %v124_v26 = vadd.f32 %v123_v5, %v122_v63  ;;  %v157_v48 = vadd.f32 %v156_v11, %v155_v60 }
  0x38   :  { %v205_v18 = vadd.f32 %v204_v15, %v203_v52  ;;  %v221_v17 = vadd.f32 %v220_v21, %v219_v2  ;;  %v237_v33 = vadd.f32 %v236_v22, %v235_v3  ;;  %v126_v58 = vsel %vm66_vm0, %v87_v34, 0.0 }
  0x39   :  { %v173_v49 = vadd.f32 %v172_v12, %v171_v56  ;;  %v189_v10 = vadd.f32 %v188_v14, %v187_v1  ;;  %v264_v35 = vsel %vm263_vm1, %v141_v24, %v124_v26  ;;  %v127_v40 = vsel %vm66_vm0, %v89_v36, 0.0 }
  0x3a   :  { %v266_v57 = vsel %vm265_vm2, %v157_v48, %v264_v35  ;;  %v142_v16 = vsel %vm66_vm0, %v91_v41, 0.0  ;;  %v143_v20 = vsel %vm66_vm0, %v93_v43, 0.0  ;;  %v128_v42 = vadd.f32 %v127_v40, %v126_v58  ;;  %v914_v40 = vld [vmem:[#allocation6 + $0x178] sm:$0xf0] }
  0x3b   :  { %v268_v13 = vsel %vm267_vm3, %v173_v49, %v266_v57  ;;  %v144_v27 = vadd.f32 %v143_v20, %v142_v16  ;;  %v158_v34 = vsel %vm66_vm0, %v95_v50, 0.0  ;;  %v1348_v36 = vunpack.c.h.bf16 %v1196_v32 }
  0x3c   :  { %v270_v25 = vsel %vm269_vm4, %v189_v10, %v268_v13  ;;  %v1349_v41 = vunpack.c.h.bf16 %v1202_v37  ;;  %v1350_v43 = vunpack.c.h.bf16 %v1204_v38  ;;  %v129_v55 = vrot.slane %v128_v42, 4  ;;  %v967_v13 = vld [vmem:[#allocation6 + $0x16c] sm:$0xf] }
  0x3d   :  { %v272_v28 = vsel %vm271_vm5, %v205_v18, %v270_v25  ;;  %v159_v29 = vsel %vm66_vm0, %v1348_v36, 0.0  ;;  %v145_v31 = vrot.slane %v144_v27, 4  ;;  %v1351_v32 = vunpack.c.h.bf16 %v1206_v39 }
  0x3e   :  { %v174_v30 = vsel %vm66_vm0, %v1349_v41, 0.0  ;;  %v175_v47 = vsel %vm66_vm0, %v1350_v43, 0.0  ;;  %v274_v51 = vsel %vm273_vm6, %v221_v17, %v272_v28  ;;  %v160_v4 = vadd.f32 %v159_v29, %v158_v34  ;;  %v963_v43 = vld [vmem:[#allocation6 + $0x14c] sm:$0xf] }
  0x3f   :  { %v276_v50 = vsel %vm275_vm7, %v237_v33, %v274_v51  ;;  %v176_v7 = vadd.f32 %v175_v47, %v174_v30  ;;  %v190_v19 = vsel %vm66_vm0, %v1351_v32, 0.0  ;;  %v1352_v37 = vunpack.c.h.bf16 %v1212_v44  ;;  %v912_v30 = vld [vmem:[#allocation6 + $0x168] sm:$0xf] }
  0x40   :  { %v130_v9 = vadd.f32 %v129_v55, %v128_v42  ;;  %v146_v38 = vadd.f32 %v145_v31, %v144_v27  ;;  %v161_v23 = vrot.slane %v160_v4, 4  ;;  %v1353_v0 = vunpack.c.h.bf16 %v1214_v45  ;;  %v784_v42 = vld [vmem:[#allocation6 + $0x68] sm:$0xf]  ;;  %v937_v27 = vld [vmem:[#allocation6 + $0x74] sm:$0xf0] }
  0x41   :  { %v191_v8 = vsel %vm66_vm0, %v1352_v37, 0.0  ;;  %v177_v59 = vrot.slane %v176_v7, 4  ;;  %v1354_v56 = vunpack.c.h.bf16 %v1216_v46  ;;  %v295_v39 = vmul.f32 0.0625, %v276_v50  ;;  %v943_v50 = vld [vmem:[#allocation6 + $0xac] sm:$0xf] }
  0x42   :  { %v192_v63 = vadd.f32 %v191_v8, %v190_v19  ;;  %v206_v60 = vsel %vm66_vm0, %v1353_v0, 0.0  ;;  %v131_v52 = vrot.slane %v130_v9, 2  ;;  %v147_v2 = vrot.slane %v146_v38, 2  ;;  %v896_v0 = vld [vmem:[#allocation6 + $0x148] sm:$0xf] }
  0x43   :  { %v207_v1 = vsel %vm66_vm0, %v1354_v56, 0.0  ;;  %v162_v3 = vadd.f32 %v161_v23, %v160_v4  ;;  %v178_v44 = vadd.f32 %v177_v59, %v176_v7  ;;  %v1355_v11 = vunpack.c.h.bf16 %v1222_v53  ;;  %v969_v4 = vld [vmem:[#allocation6 + $0x174] sm:$0xf0]  ;;  %v818_v7 = vld [vmem:[#allocation6 + $0xb8] sm:$0xf0] }
  0x44   :  { %v193_v5 = vrot.slane %v192_v63, 4  ;;  %v208_v6 = vadd.f32 %v207_v1, %v206_v60  ;;  %v1314_v14 = vpack.c.bf16 %v295_v39, %v295_v39  ;;  %v132_v45 = vadd.f32 %v131_v52, %v130_v9  ;;  %v768_v9 = vld [vmem:[#allocation6 + $0x48] sm:$0xf]  ;;  %v965_v60 = vld [vmem:[#allocation6 + $0x154] sm:$0xf0] }
  0x45   :  { %v222_v12 = vsel %vm66_vm0, %v1355_v11, 0.0  ;;  %v148_v15 = vadd.f32 %v147_v2, %v146_v38  ;;  %v163_v21 = vrot.slane %v162_v3, 2  ;;  %v179_v22 = vrot.slane %v178_v44, 2  ;;  %v933_v38 = vld [vmem:[#allocation6 + $0x54] sm:$0xf0] }
  0x46   :  { %v194_v46 = vadd.f32 %v193_v5, %v192_v63  ;;  %v209_v26 = vrot.slane %v208_v6, 4  ;;  %v1356_v24 = vunpack.c.h.bf16 %v1224_v54  ;;  %634 = vmatmul.bf16.vlgmr.msra.gmra.mxu2 %v1314_v14  ;;  %608 = vmatmul.bf16.vlgmr.msra.gmra.mxu0 %v1314_v14  ;;  %v133_v49 = vrot.slane %v132_v45, 1  ;;  %v939_v2 = vld [vmem:[#allocation6 + $0x8c] sm:$0xf] }
  0x47   :  { %v149_v53 = vrot.slane %v148_v15, 1  ;;  %v164_v10 = vadd.f32 %v163_v21, %v162_v3  ;;  %v180_v17 = vadd.f32 %v179_v22, %v178_v44  ;;  %v1357_v57 = vunpack.c.h.bf16 %v1230_v61  ;;  %v898_v61 = vld [vmem:[#allocation6 + $0x158] sm:$0xf0] }
  0x48   :  { %v223_v48 = vsel %vm66_vm0, %v1356_v24, 0.0  ;;  %v195_v33 = vrot.slane %v194_v46, 2  ;;  %v210_v35 = vadd.f32 %v209_v26, %v208_v6  ;;  %v134_v54 = vadd.f32 %v133_v49, %v132_v45  ;;  %v802_v3 = vld [vmem:[#allocation6 + $0x98] sm:$0xf0]  ;;  %v752_v26 = vld [vmem:[#allocation6 + $0x28] sm:$0xf] }
  0x49   :  { %v224_v18 = vadd.f32 %v223_v48, %v222_v12  ;;  %v238_v58 = vsel %vm66_vm0, %v1357_v57, 0.0  ;;  %v150_v16 = vadd.f32 %v149_v53, %v148_v15  ;;  %v165_v20 = vrot.slane %v164_v10, 1  ;;  %v959_v12 = vld [vmem:[#allocation6 + $0x12c] sm:$0xf]  ;;  %v882_v45 = vld [vmem:[#allocation6 + $0x138] sm:$0xf0] }
  0x4a   :  { %v181_v34 = vrot.slane %v180_v17, 1  ;;  %v196_v28 = vadd.f32 %v195_v33, %v194_v46  ;;  %v211_v36 = vrot.slane %v210_v35, 2  ;;  %v1358_v29 = vunpack.c.h.bf16 %v1232_v62  ;;  %v929_v24 = vld [vmem:[#allocation6 + $0x34] sm:$0xf0]  ;;  %v935_v33 = vld [vmem:[#allocation6 + $0x6c] sm:$0xf] }
  0x4b   :  { %v225_v25 = vrot.slane %v224_v18, 4  ;;  %v166_v47 = vadd.f32 %v165_v20, %v164_v10  ;;  %v277_v31 = vsel %vm263_vm1, %v150_v16, %v134_v54  ;;  %v917_v8 = vor.u32 %v967_v13, %v914_v40  ;;  %v880_v10 = vld [vmem:[#allocation6 + $0x128] sm:$0xf]  ;;  %v955_v54 = vld [vmem:[#allocation6 + $0x10c] sm:$0xf] }
  0x4c   :  { %v239_v41 = vsel %vm66_vm0, %v1358_v29, 0.0  ;;  %v182_v32 = vadd.f32 %v181_v34, %v180_v17  ;;  %v197_v19 = vrot.slane %v196_v28, 1  ;;  %v212_v37 = vadd.f32 %v211_v36, %v210_v35  ;;  %v786_v35 = vld [vmem:[#allocation6 + $0x78] sm:$0xf0]  ;;  %v957_v36 = vld [vmem:[#allocation6 + $0x114] sm:$0xf0] }
  0x4d   :  { %v226_v51 = vadd.f32 %v225_v25, %v224_v18  ;;  %v240_v55 = vadd.f32 %v239_v41, %v238_v58  ;;  %v278_v59 = vsel %vm265_vm2, %v166_v47, %v277_v31  ;;  %v785_v63 = vor.u32 %v937_v27, %v784_v42  ;;  %695 = vmatpush.bf16.msrb.mxu2 %v917_v8  ;;  %v961_v18 = vld [vmem:[#allocation6 + $0x134] sm:$0xf0]  ;;  %v866_v16 = vld [vmem:[#allocation6 + $0x118] sm:$0xf0]  ;;  %v736_v25 = vld [vmem:[#allocation6 + $0x8] sm:$0xf] }
  0x4e   :  { %v198_v56 = vadd.f32 %v197_v19, %v196_v28  ;;  %v213_v1 = vrot.slane %v212_v37, 1  ;;  %v279_v39 = vsel %vm267_vm3, %v182_v32, %v278_v59  ;;  %v913_v52 = vor.u32 %v969_v4, %v912_v30  ;;  %v925_v42 = vld [vmem:[#allocation6 + $0x14] sm:$0xf0]  ;;  %v864_v28 = vld [vmem:[#allocation6 + $0x108] sm:$0xf] }
  0x4f   :  { %v227_v62 = vrot.slane %v226_v51, 2  ;;  %v241_v23 = vrot.slane %v240_v55, 4  ;;  %656 = vmatpush.bf16.msrb.mxu1 %v785_v63  ;;  %v821_v6 = vor.u32 %v943_v50, %v818_v7  ;;  %v901_v11 = vor.u32 %v963_v43, %v898_v61  ;;  %v931_v30 = vld [vmem:[#allocation6 + $0x4c] sm:$0xf]  ;;  %v770_v43 = vld [vmem:[#allocation6 + $0x58] sm:$0xf0] }
  0x50   :  { %v214_v15 = vadd.f32 %v213_v1, %v212_v37  ;;  %v280_v21 = vsel %vm269_vm4, %v198_v56, %v279_v39  ;;  %669 = vmatpush.bf16.msrb.mxu3 %v913_v52  ;;  %v769_v22 = vor.u32 %v933_v38, %v768_v9  ;;  %v897_v46 = vor.u32 %v965_v60, %v896_v0  ;;  %v69_v61 = vld [vmem:[#allocation2 + $0x8] sm:$0xff]  ;;  %v927_v7 = vld [vmem:[#allocation6 + $0x2c] sm:$0xf]  ;;  %v347_v56 = vld [vmem:[#allocation8] sm:$0xf] }
  0x51   :  { %v228_v44 = vadd.f32 %v227_v62, %v226_v51  ;;  %v242_v5 = vadd.f32 %v241_v23, %v240_v55  ;;  %680 = vmatpush.bf16.msrb.mxu0 %v821_v6  ;;  %v805_v53 = vor.u32 %v939_v2, %v802_v3  ;;  %696 = vmatpush.bf16.msrb.mxu2 %v901_v11  ;;  %v754_v32 = vld [vmem:[#allocation6 + $0x38] sm:$0xf0]  ;;  %v923_v37 = vld [vmem:[#allocation6 + $0xc] sm:$0xf]  ;;  %v349_v1 = vperm.slane %v347_v56, 0 }
  0x52   :  { %v885_v17 = vor.u32 %v959_v12, %v882_v45  ;;  %v281_v13 = vsel %vm271_vm5, %v214_v15, %v280_v21  ;;  %v753_v40 = vor.u32 %v929_v24, %v752_v26  ;;  %v881_v20 = vor.u32 %v961_v18, %v880_v10  ;;  %v738_v8 = vld [vmem:[#allocation6 + $0x18] sm:$0xf0] }
  0x53   :  { %v229_v48 = vrot.slane %v228_v44, 1  ;;  %v243_v49 = vrot.slane %v242_v5, 2  ;;  %657 = vmatpush.bf16.msrb.mxu1 %v769_v22  ;;  %v789_v34 = vor.u32 %v935_v33, %v786_v35  ;;  %v869_v41 = vor.u32 %v955_v54, %v866_v16 }
  0x54   :  { %670 = vmatpush.bf16.msrb.mxu3 %v897_v46  ;;  %v737_v51 = vor.u32 %v925_v42, %v736_v25  ;;  %v865_v55 = vor.u32 %v957_v36, %v864_v28  ;;  %v773_v4 = vor.u32 %v931_v30, %v770_v43  ;;  %v757_v19 = vor.u32 %v927_v7, %v754_v32 }
  0x55   :  { %v230_v57 = vadd.f32 %v229_v48, %v228_v44  ;;  %v244_v58 = vadd.f32 %v243_v49, %v242_v5  ;;  %681 = vmatpush.bf16.msrb.mxu0 %v805_v53  ;;  %697 = vmatpush.bf16.msrb.mxu2 %v885_v17  ;;  %v741_v9 = vor.u32 %v923_v37, %v738_v8  ;;  %v350_v52 = vperm.slane %v347_v56, 1 }
  0x56   :  { %v352_v3 = vperm.slane %v347_v56, 3  ;;  %v351_v26 = vperm.slane %v347_v56, 2 }
  0x57   :  { %v245_v27 = vrot.slane %v244_v58, 1  ;;  %v282_v29 = vsel %vm273_vm6, %v230_v57, %v281_v13  ;;  %658 = vmatpush.bf16.msrb.mxu1 %v753_v40 }
  0x58   :  { %671 = vmatpush.bf16.msrb.mxu3 %v881_v20 }
  0x59   :  { %v246_v47 = vadd.f32 %v245_v27, %v244_v58  ;;  %682 = vmatpush.bf16.msrb.mxu0 %v789_v34  ;;  %698 = vmatpush.bf16.msrb.mxu2 %v869_v41 }
  0x5b   :  { %v283_v31 = vsel %vm275_vm7, %v246_v47, %v282_v29  ;;  %659 = vmatpush.bf16.msrb.mxu1 %v737_v51 }
  0x5c   :  { %v287_v50 = vadd.f32 %v283_v31, %v69_v61  ;;  %672 = vmatpush.bf16.msrb.mxu3 %v865_v55 }
  0x5d   :  { %683 = vmatpush.bf16.msrb.mxu0 %v773_v4 }
  0x5e   :  { %289 = vst.msk [vmem:[#allocation2 + $0x8] sm:$0xff] %vm66_vm0, %v287_v50 }
  0x61   :  { %684 = vmatpush.bf16.msrb.mxu0 %v757_v19 }
  0x65   :  { %v294_v38 = vld [vmem:[#allocation2 + $0x8] sm:$0xff]  ;;  %685 = vmatpush.bf16.msrb.mxu0 %v741_v9 }
  0x66   :  { %v296_v62 = vmul.f32 0.0625, %v294_v38 }
  0x68   :  { %v298_v23 = vpack.c.bf16 %v296_v62, %v296_v62  ;;  %686 = vmatmul.bf16.vlgmr.msrb.gmra.mxu0 %v1314_v14 }
  0x6a   :  { %918 = vmatmul.msk.bf16.vlgmr.msra.gmra.mxu1 %vm66_vm0, %v298_v23  ;;  %919 = vmatmul.msk.bf16.vlgmr.msra.gmra.mxu3 %vm66_vm0, %v298_v23 }
  0x6b   :  { %921 = vmatmul.msk.bf16.vlgmr.msrb.gmra.mxu2 %vm66_vm0, %v298_v23 }
  0x7a   :  { %660 = vmatmul.bf16.vlgmr.msrb.gmra.mxu1 %v1314_v14  ;;  %920 = vmatmul.msk.bf16.vlgmr.msrb.gmra.mxu3 %vm66_vm0, %v298_v23 }
  0xc3   :  { %v609_v59 = vpop.f32.mrf.mxu0 }
  0xc4   :  { %v610_v39 = vadd.f32 %v609_v59, %v349_v1 }
  0xc9   :  { %v635_v63 = vpop.f32.mrf.mxu2 }
  0xca   :  { %v636_v6 = vadd.f32 %v635_v63, %v350_v52 }
  0xcb   :  { %v611_v0 = vpop.f32.mrf.mxu0 }
  0xd1   :  { %v637_v60 = vpop.f32.mrf.mxu2 }
  0xe5   :  { %v687_v5 = vpop.f32.mrf.mxu0 }
  0xe6   :  { %v688_v11 = vadd.f32 %v687_v5, %v352_v3 }
  0xe7   :  { %v622_v2 = vpop.f32.mrf.mxu1 }
  0xe8   :  { %v623_v44 = vadd.f32 %v622_v2, %v610_v39 }
  0xea   :  { %704 = vst [vmem:[#allocation9] sm:$0xff] %v623_v44 }
  0xed   :  { %v648_v12 = vpop.f32.mrf.mxu3  ;;  %v689_v22 = vpop.f32.mrf.mxu0 }
  0xee   :  { %v649_v45 = vadd.f32 %v648_v12, %v636_v6  ;;  %v700_v14 = vpop.f32.mrf.mxu2 }
  0xef   :  { %v624_v15 = vpop.f32.mrf.mxu1  ;;  %v701_v21 = vadd.f32 %v700_v14, %v688_v11 }
  0xf0   :  { %705 = vst [vmem:[#allocation9 + $0x8] sm:$0xff] %v649_v45 }
  0xf1   :  { %707 = vst [vmem:[#allocation9 + $0x18] sm:$0xff] %v701_v21 }
  0xf5   :  { %v650_v46 = vpop.f32.mrf.mxu3 }
  0xf6   :  { %v702_v24 = vpop.f32.mrf.mxu2 }
  0xf7   :  { %v661_v48 = vpop.f32.mrf.mxu1 }
  0xf8   :  { %v662_v49 = vadd.f32 %v661_v48, %v351_v26 }
  0xfd   :  { %v674_v53 = vpop.f32.mrf.mxu3 }
  0xfe   :  { %v675_v10 = vadd.f32 %v674_v53, %v662_v49 }
  0xff   :  { %v663_v18 = vpop.f32.mrf.mxu1 }
 0x100   :  { %706 = vst [vmem:[#allocation9 + $0x10] sm:$0xff] %v675_v10 }
 0x101   :  { %718 = dma.vmem_to_hbm [thread:$0]  %s714_s2, 512, %s716_s5, [#allocation5]  }
 0x105   :  { %v676_v17 = vpop.f32.mrf.mxu3 }
 0x106   :  { %1079 = dma.done.wait [#allocation5], 512  }
 0x107   :  { %1080 = vsyncadd [#allocation5], 4294966784 }
 0x108   :  { %723 = vsyncpa [#allocation4], 1 }
 0x109   :  { %724 = vsyncpa [#allocation7], 1 }
 0x10a   :  { %725 = vsyncpa [#allocation5], 1 }

</bundles_post_ra>
